<compile_context>
chip_gen: v7x
topology: tpu7x:2x2x1
jax: 0.10.0
libtpu: 0.0.40
codegen_flags: <defaults>
</compile_context>

<pallas_src>
import functools

import jax
import jax.numpy as jnp
from jax.experimental import pallas as pl
from jax.experimental.pallas import tpu as pltpu

_APPROX_GELU = True  # set False for exact (erf) GELU, matching torch.nn.GELU default


def _gelu(x):
    return jax.nn.gelu(x, approximate=_APPROX_GELU)


def _patch_embed_kernel(x_ref, w_ref, b_ref, o_ref, xp_ref, *, p, pw, W, D):
    """One tile of packed patch-rows.

    x_ref : (TM, p*W)    raw image rows (p rows of width W per patch-row)
    w_ref : (p*p, D)     compact patch-embedding weight, f32 (VMEM-resident)
    b_ref : (1, D)       conv bias, f32 (VMEM-resident)
    o_ref : (TM, pw*D)   embedded patches, (patch, channel) minor order
    xp_ref: (TM, pw*p*p) VMEM scratch: patch-major relayout of the input tile (f32)
    """
    # ---- in-VMEM relayout: lane order (kh, j, kw) -> patch-major (j, kh, kw) ----
    # Narrow static ref-to-ref copies (masked stores + lane rotates); this is what
    # enables the compact K = p*p contraction instead of a pw-fold zero-inflated one.
    for j in range(pw):
        for kh in range(p):
            src = kh * W + j * p
            dst = (j * p + kh) * p
            xp_ref[:, dst:dst + p] = x_ref[:, src:src + p].astype(jnp.float32)

    w = w_ref[...]
    b = b_ref[...]

    # ---- pw compact matmuls (TM, p*p) @ (p*p, D) with f32 accumulation ----
    for j in range(pw):
        xj = xp_ref[:, j * p * p:(j + 1) * p * p]
        yj = jnp.dot(xj, w, preferred_element_type=jnp.float32) + b
        # Direct store into the j-th D-wide lane block: unmasked full-vreg stores
        # whenever D % 128 == 0 (real MAE); masked-but-correct at toy D.
        o_ref[:, j * D:(j + 1) * D] = _gelu(yj).astype(o_ref.dtype)


@functools.partial(jax.jit, static_argnames=("patch_size", "out_dtype"))
def mae_encoder_forward(x, conv_w, conv_b, patch_size, out_dtype=jnp.float32):
    """x: (B, S, H, W) f32 or bf16.  conv_w: (D, 1, p, p) PyTorch OIHW.  conv_b: (D,)."""
    B, S, H, W = x.shape
    D = conv_w.shape[0]
    p = patch_size
    assert H % p == 0 and W % p == 0, "image size must be divisible by patch size"
    ph, pw = H // p, W // p

    M0 = B * S * ph            # packed patch-rows in the whole batch
    Kin = p * W                # raw pixels per patch-row (pure row-major view)
    Kout = pw * D              # embedded features per patch-row

    # ---- glue: zero-copy input view + tiny compact weight (no HBM transpose) ----
    x2d = x.reshape(M0, Kin)
    w_c = conv_w.reshape(D, p * p).astype(jnp.float32).T        # (p*p, D), (kh,kw) rows
    b_c = conv_b.astype(jnp.float32).reshape(1, D)

    # ---- tiling: TM from a ~2 MiB per-block byte budget, grid_m >= 4 if possible ----
    in_item = jnp.dtype(x.dtype).itemsize
    out_item = jnp.dtype(out_dtype).itemsize
    block_budget = 2 * 2 ** 20
    tm = max(8, block_budget // (max(in_item, out_item) * max(Kin, Kout)))
    if M0 >= 32:
        tm = min(tm, M0 // 4)      # keep >= 4 grid steps: pipelining + v7x dual-TC
    elif M0 >= 16:
        tm = min(tm, M0 // 2)
    tm = min(tm, M0)
    if tm >= 128:
        tm = (tm // 128) * 128
    elif tm >= 16:
        tm = (tm // 16) * 16
    elif tm >= 8:
        tm = (tm // 8) * 8
    else:
        tm = M0                    # tiny problem: single full-extent block
    grid_m = pl.cdiv(M0, tm)

    # ---- VMEM budget: double-buffered streams + resident weight/bias + scratch ----
    in_bytes = tm * Kin * in_item
    out_bytes = tm * Kout * out_item
    resident = 4 * (p * p * D + D)
    scratch = 4 * tm * pw * p * p
    vmem_need = 2 * (in_bytes + out_bytes) + 2 * resident + scratch
    vmem_limit = int(min(40 * 2 ** 20, max(16 * 2 ** 20, 2 * vmem_need + 4 * 2 ** 20)))

    kernel = functools.partial(_patch_embed_kernel, p=p, pw=pw, W=W, D=D)

    out = pl.pallas_call(
        kernel,
        out_shape=jax.ShapeDtypeStruct((M0, Kout), out_dtype),
        grid=(grid_m,),
        in_specs=[
            pl.BlockSpec((tm, Kin), lambda i: (i, 0)),
            pl.BlockSpec((p * p, D), lambda i: (0, 0)),   # constant -> resident
            pl.BlockSpec((1, D), lambda i: (0, 0)),       # constant -> resident
        ],
        out_specs=pl.BlockSpec((tm, Kout), lambda i: (i, 0)),
        scratch_shapes=[pltpu.VMEM((tm, pw * p * p), jnp.float32)],
        compiler_params=pltpu.CompilerParams(
            dimension_semantics=("parallel",),
            vmem_limit_bytes=vmem_limit,
        ),
        cost_estimate=pl.CostEstimate(
            flops=2 * M0 * pw * p * p * D,
            transcendentals=M0 * pw * D,
            bytes_accessed=(M0 * Kin * in_item
                            + 4 * (p * p * D + D)
                            + M0 * Kout * out_item),
        ),
    )(x2d, w_c, b_c)

    # (M0, pw*D) row-major == (B, S, ph, pw, D) -> flatten per image.
    return out.reshape(B, S, ph * pw * D)


def _reference_forward(x, conv_w, conv_b, patch_size):
    """Pure-JAX reference (explicit patchify + matmul) for correctness checking."""
    B, S, H, W = x.shape
    D = conv_w.shape[0]
    p = patch_size
    ph, pw = H // p, W // p
    N = B * S
    xr = x.astype(jnp.float32).reshape(N, ph, p, pw, p).transpose(0, 1, 3, 2, 4)
    xr = xr.reshape(N * ph * pw, p * p)
    y = xr @ conv_w.reshape(D, p * p).astype(jnp.float32).T + conv_b.astype(jnp.float32)[None, :]
    y = _gelu(y)
    return y.reshape(B, S, ph * pw * D)


if __name__ == "__main__":
    key = jax.random.PRNGKey(0)
    k_x, k_w, k_b = jax.random.split(key, 3)

    # Small shapes consistent with the forward: (batch, seqlen, H, W)
    B, S, H, W = 2, 8, 16, 16
    patch_size = 4
    embed_dim = 32

    x = jax.random.normal(k_x, (B, S, H, W), dtype=jnp.float32)
    # Deterministic synthetic parameters (PyTorch Conv2d OIHW layout).
    conv_w = 0.05 * jax.random.normal(
        k_w, (embed_dim, 1, patch_size, patch_size), dtype=jnp.float32
    )
    conv_b = 0.01 * jax.random.normal(k_b, (embed_dim,), dtype=jnp.float32)

    ref = _reference_forward(x, conv_w, conv_b, patch_size)

    # Exact-f32 path (module semantics).
    out = jax.block_until_ready(mae_encoder_forward(x, conv_w, conv_b, patch_size))
    assert out.shape == (B, S, (H // patch_size) * (W // patch_size) * embed_dim)
    assert jnp.allclose(out, ref, atol=2e-5, rtol=2e-5)

    # Optional bf16-streamed path (halves HBM traffic on this bandwidth-bound kernel).
    out_bf16 = jax.block_until_ready(
        mae_encoder_forward(x.astype(jnp.bfloat16), conv_w, conv_b, patch_size,
                            out_dtype=jnp.bfloat16))
    assert jnp.allclose(out_bf16.astype(jnp.float32), ref, atol=5e-2, rtol=5e-2)

    print("KERNEL_OK")
</pallas_src>

<mosaic_0001>
module attributes {stable_mosaic.version = 11 : i64} {
  func.func @_patch_embed_kernel(%arg0: i32, %arg1: memref<16x64xf32, #tpu.memory_space<vmem>>, %arg2: memref<16x32xf32, #tpu.memory_space<vmem>>, %arg3: memref<1x32xf32, #tpu.memory_space<vmem>>, %arg4: memref<16x128xf32, #tpu.memory_space<vmem>>, %arg5: memref<16x64xf32, #tpu.memory_space<vmem>>) attributes {dimension_semantics = [#tpu.dimension_semantics<parallel>], iteration_bounds = array<i64: 4>, scalar_prefetch = 0 : i64, scratch_operands = 1 : i64, tpu.core_type = #tpu.core_type<tc>, window_params = [{transform_indices = @transform_0, window_bounds = array<i64: 16, 64>}, {pipeline_mode = #tpu.pipeline_mode<synchronous>, transform_indices = @transform_1, window_bounds = array<i64: 16, 32>}, {pipeline_mode = #tpu.pipeline_mode<synchronous>, transform_indices = @transform_2, window_bounds = array<i64: 1, 32>}, {transform_indices = @transform_3, window_bounds = array<i64: 16, 128>}]} {
    %c0 = arith.constant 0 : index
    %c0_0 = arith.constant 0 : index
    %0 = vector.load %arg1[%c0, %c0_0] : memref<16x64xf32, #tpu.memory_space<vmem>>, vector<16x4xf32>
    %c0_1 = arith.constant 0 : index
    %c0_2 = arith.constant 0 : index
    %1 = vector.load %arg5[%c0_1, %c0_2] : memref<16x64xf32, #tpu.memory_space<vmem>>, vector<16x4xf32>
    tpu.vector_store %arg5[%c0_1, %c0_2], %0 {strides = array<i32>} : memref<16x64xf32, #tpu.memory_space<vmem>>, vector<16x4xf32>,
    %c0_3 = arith.constant 0 : index
    %c16 = arith.constant 16 : index
    %2 = vector.load %arg1[%c0_3, %c16] : memref<16x64xf32, #tpu.memory_space<vmem>>, vector<16x4xf32>
    %c0_4 = arith.constant 0 : index
    %c4 = arith.constant 4 : index
    %3 = vector.load %arg5[%c0_4, %c4] : memref<16x64xf32, #tpu.memory_space<vmem>>, vector<16x4xf32>
    tpu.vector_store %arg5[%c0_4, %c4], %2 {strides = array<i32>} : memref<16x64xf32, #tpu.memory_space<vmem>>, vector<16x4xf32>,
    %c0_5 = arith.constant 0 : index
    %c32 = arith.constant 32 : index
    %4 = vector.load %arg1[%c0_5, %c32] : memref<16x64xf32, #tpu.memory_space<vmem>>, vector<16x4xf32>
    %c0_6 = arith.constant 0 : index
    %c8 = arith.constant 8 : index
    %5 = vector.load %arg5[%c0_6, %c8] : memref<16x64xf32, #tpu.memory_space<vmem>>, vector<16x4xf32>
    tpu.vector_store %arg5[%c0_6, %c8], %4 {strides = array<i32>} : memref<16x64xf32, #tpu.memory_space<vmem>>, vector<16x4xf32>,
    %c0_7 = arith.constant 0 : index
    %c48 = arith.constant 48 : index
    %6 = vector.load %arg1[%c0_7, %c48] : memref<16x64xf32, #tpu.memory_space<vmem>>, vector<16x4xf32>
    %c0_8 = arith.constant 0 : index
    %c12 = arith.constant 12 : index
    %7 = vector.load %arg5[%c0_8, %c12] : memref<16x64xf32, #tpu.memory_space<vmem>>, vector<16x4xf32>
    tpu.vector_store %arg5[%c0_8, %c12], %6 {strides = array<i32>} : memref<16x64xf32, #tpu.memory_space<vmem>>, vector<16x4xf32>,
    %c0_9 = arith.constant 0 : index
    %c4_10 = arith.constant 4 : index
    %8 = vector.load %arg1[%c0_9, %c4_10] : memref<16x64xf32, #tpu.memory_space<vmem>>, vector<16x4xf32>
    %c0_11 = arith.constant 0 : index
    %c16_12 = arith.constant 16 : index
    %9 = vector.load %arg5[%c0_11, %c16_12] : memref<16x64xf32, #tpu.memory_space<vmem>>, vector<16x4xf32>
    tpu.vector_store %arg5[%c0_11, %c16_12], %8 {strides = array<i32>} : memref<16x64xf32, #tpu.memory_space<vmem>>, vector<16x4xf32>,
    %c0_13 = arith.constant 0 : index
    %c20 = arith.constant 20 : index
    %10 = vector.load %arg1[%c0_13, %c20] : memref<16x64xf32, #tpu.memory_space<vmem>>, vector<16x4xf32>
    %c0_14 = arith.constant 0 : index
    %c20_15 = arith.constant 20 : index
    %11 = vector.load %arg5[%c0_14, %c20_15] : memref<16x64xf32, #tpu.memory_space<vmem>>, vector<16x4xf32>
    tpu.vector_store %arg5[%c0_14, %c20_15], %10 {strides = array<i32>} : memref<16x64xf32, #tpu.memory_space<vmem>>, vector<16x4xf32>,
    %c0_16 = arith.constant 0 : index
    %c36 = arith.constant 36 : index
    %12 = vector.load %arg1[%c0_16, %c36] : memref<16x64xf32, #tpu.memory_space<vmem>>, vector<16x4xf32>
    %c0_17 = arith.constant 0 : index
    %c24 = arith.constant 24 : index
    %13 = vector.load %arg5[%c0_17, %c24] : memref<16x64xf32, #tpu.memory_space<vmem>>, vector<16x4xf32>
    tpu.vector_store %arg5[%c0_17, %c24], %12 {strides = array<i32>} : memref<16x64xf32, #tpu.memory_space<vmem>>, vector<16x4xf32>,
    %c0_18 = arith.constant 0 : index
    %c52 = arith.constant 52 : index
    %14 = vector.load %arg1[%c0_18, %c52] : memref<16x64xf32, #tpu.memory_space<vmem>>, vector<16x4xf32>
    %c0_19 = arith.constant 0 : index
    %c28 = arith.constant 28 : index
    %15 = vector.load %arg5[%c0_19, %c28] : memref<16x64xf32, #tpu.memory_space<vmem>>, vector<16x4xf32>
    tpu.vector_store %arg5[%c0_19, %c28], %14 {strides = array<i32>} : memref<16x64xf32, #tpu.memory_space<vmem>>, vector<16x4xf32>,
    %c0_20 = arith.constant 0 : index
    %c8_21 = arith.constant 8 : index
    %16 = vector.load %arg1[%c0_20, %c8_21] : memref<16x64xf32, #tpu.memory_space<vmem>>, vector<16x4xf32>
    %c0_22 = arith.constant 0 : index
    %c32_23 = arith.constant 32 : index
    %17 = vector.load %arg5[%c0_22, %c32_23] : memref<16x64xf32, #tpu.memory_space<vmem>>, vector<16x4xf32>
    tpu.vector_store %arg5[%c0_22, %c32_23], %16 {strides = array<i32>} : memref<16x64xf32, #tpu.memory_space<vmem>>, vector<16x4xf32>,
    %c0_24 = arith.constant 0 : index
    %c24_25 = arith.constant 24 : index
    %18 = vector.load %arg1[%c0_24, %c24_25] : memref<16x64xf32, #tpu.memory_space<vmem>>, vector<16x4xf32>
    %c0_26 = arith.constant 0 : index
    %c36_27 = arith.constant 36 : index
    %19 = vector.load %arg5[%c0_26, %c36_27] : memref<16x64xf32, #tpu.memory_space<vmem>>, vector<16x4xf32>
    tpu.vector_store %arg5[%c0_26, %c36_27], %18 {strides = array<i32>} : memref<16x64xf32, #tpu.memory_space<vmem>>, vector<16x4xf32>,
    %c0_28 = arith.constant 0 : index
    %c40 = arith.constant 40 : index
    %20 = vector.load %arg1[%c0_28, %c40] : memref<16x64xf32, #tpu.memory_space<vmem>>, vector<16x4xf32>
    %c0_29 = arith.constant 0 : index
    %c40_30 = arith.constant 40 : index
    %21 = vector.load %arg5[%c0_29, %c40_30] : memref<16x64xf32, #tpu.memory_space<vmem>>, vector<16x4xf32>
    tpu.vector_store %arg5[%c0_29, %c40_30], %20 {strides = array<i32>} : memref<16x64xf32, #tpu.memory_space<vmem>>, vector<16x4xf32>,
    %c0_31 = arith.constant 0 : index
    %c56 = arith.constant 56 : index
    %22 = vector.load %arg1[%c0_31, %c56] : memref<16x64xf32, #tpu.memory_space<vmem>>, vector<16x4xf32>
    %c0_32 = arith.constant 0 : index
    %c44 = arith.constant 44 : index
    %23 = vector.load %arg5[%c0_32, %c44] : memref<16x64xf32, #tpu.memory_space<vmem>>, vector<16x4xf32>
    tpu.vector_store %arg5[%c0_32, %c44], %22 {strides = array<i32>} : memref<16x64xf32, #tpu.memory_space<vmem>>, vector<16x4xf32>,
    %c0_33 = arith.constant 0 : index
    %c12_34 = arith.constant 12 : index
    %24 = vector.load %arg1[%c0_33, %c12_34] : memref<16x64xf32, #tpu.memory_space<vmem>>, vector<16x4xf32>
    %c0_35 = arith.constant 0 : index
    %c48_36 = arith.constant 48 : index
    %25 = vector.load %arg5[%c0_35, %c48_36] : memref<16x64xf32, #tpu.memory_space<vmem>>, vector<16x4xf32>
    tpu.vector_store %arg5[%c0_35, %c48_36], %24 {strides = array<i32>} : memref<16x64xf32, #tpu.memory_space<vmem>>, vector<16x4xf32>,
    %c0_37 = arith.constant 0 : index
    %c28_38 = arith.constant 28 : index
    %26 = vector.load %arg1[%c0_37, %c28_38] : memref<16x64xf32, #tpu.memory_space<vmem>>, vector<16x4xf32>
    %c0_39 = arith.constant 0 : index
    %c52_40 = arith.constant 52 : index
    %27 = vector.load %arg5[%c0_39, %c52_40] : memref<16x64xf32, #tpu.memory_space<vmem>>, vector<16x4xf32>
    tpu.vector_store %arg5[%c0_39, %c52_40], %26 {strides = array<i32>} : memref<16x64xf32, #tpu.memory_space<vmem>>, vector<16x4xf32>,
    %c0_41 = arith.constant 0 : index
    %c44_42 = arith.constant 44 : index
    %28 = vector.load %arg1[%c0_41, %c44_42] : memref<16x64xf32, #tpu.memory_space<vmem>>, vector<16x4xf32>
    %c0_43 = arith.constant 0 : index
    %c56_44 = arith.constant 56 : index
    %29 = vector.load %arg5[%c0_43, %c56_44] : memref<16x64xf32, #tpu.memory_space<vmem>>, vector<16x4xf32>
    tpu.vector_store %arg5[%c0_43, %c56_44], %28 {strides = array<i32>} : memref<16x64xf32, #tpu.memory_space<vmem>>, vector<16x4xf32>,
    %c0_45 = arith.constant 0 : index
    %c60 = arith.constant 60 : index
    %30 = vector.load %arg1[%c0_45, %c60] : memref<16x64xf32, #tpu.memory_space<vmem>>, vector<16x4xf32>
    %c0_46 = arith.constant 0 : index
    %c60_47 = arith.constant 60 : index
    %31 = vector.load %arg5[%c0_46, %c60_47] : memref<16x64xf32, #tpu.memory_space<vmem>>, vector<16x4xf32>
    tpu.vector_store %arg5[%c0_46, %c60_47], %30 {strides = array<i32>} : memref<16x64xf32, #tpu.memory_space<vmem>>, vector<16x4xf32>,
    %c0_48 = arith.constant 0 : index
    %c0_49 = arith.constant 0 : index
    %32 = vector.load %arg2[%c0_48, %c0_49] : memref<16x32xf32, #tpu.memory_space<vmem>>, vector<16x32xf32>
    %c0_50 = arith.constant 0 : index
    %c0_51 = arith.constant 0 : index
    %33 = vector.load %arg3[%c0_50, %c0_51] : memref<1x32xf32, #tpu.memory_space<vmem>>, vector<1x32xf32>
    %c0_52 = arith.constant 0 : index
    %c0_53 = arith.constant 0 : index
    %34 = vector.load %arg5[%c0_52, %c0_53] : memref<16x64xf32, #tpu.memory_space<vmem>>, vector<16x16xf32>
    %cst = arith.constant dense<0.000000e+00> : vector<16x32xf32>
    %35 = tpu.matmul %34, %32, %cst {dimension_numbers = #tpu.dot_dimension_numbers<[1], [0], [0], [1], [0, 0, 1, 1], [], []>} : vector<16x16xf32>, vector<16x32xf32>, vector<16x32xf32> -> vector<16x32xf32>
    %36 = vector.broadcast %33 : vector<1x32xf32> to vector<16x32xf32>
    %37 = arith.addf %35, %36 : vector<16x32xf32>
    %38 = arith.mulf %37, %37 : vector<16x32xf32>
    %39 = arith.mulf %37, %38 : vector<16x32xf32>
    %cst_54 = arith.constant 4.471500e-02 : f32
    %40 = vector.broadcast %cst_54 : f32 to vector<16x32xf32>
    %41 = arith.mulf %40, %39 : vector<16x32xf32>
    %42 = arith.addf %37, %41 : vector<16x32xf32>
    %cst_55 = arith.constant 0.797884583 : f32
    %43 = vector.broadcast %cst_55 : f32 to vector<16x32xf32>
    %44 = arith.mulf %43, %42 : vector<16x32xf32>
    %45 = math.tanh %44 : vector<16x32xf32>
    %cst_56 = arith.constant 1.000000e+00 : f32
    %46 = vector.broadcast %cst_56 : f32 to vector<16x32xf32>
    %47 = arith.addf %46, %45 : vector<16x32xf32>
    %cst_57 = arith.constant 5.000000e-01 : f32
    %48 = vector.broadcast %cst_57 : f32 to vector<16x32xf32>
    %49 = arith.mulf %48, %47 : vector<16x32xf32>
    %50 = arith.mulf %37, %49 : vector<16x32xf32>
    %c0_58 = arith.constant 0 : index
    %c0_59 = arith.constant 0 : index
    %51 = vector.load %arg4[%c0_58, %c0_59] : memref<16x128xf32, #tpu.memory_space<vmem>>, vector<16x32xf32>
    tpu.vector_store %arg4[%c0_58, %c0_59], %50 {strides = array<i32>} : memref<16x128xf32, #tpu.memory_space<vmem>>, vector<16x32xf32>,
    %c0_60 = arith.constant 0 : index
    %c16_61 = arith.constant 16 : index
    %52 = vector.load %arg5[%c0_60, %c16_61] : memref<16x64xf32, #tpu.memory_space<vmem>>, vector<16x16xf32>
    %cst_62 = arith.constant dense<0.000000e+00> : vector<16x32xf32>
    %53 = tpu.matmul %52, %32, %cst_62 {dimension_numbers = #tpu.dot_dimension_numbers<[1], [0], [0], [1], [0, 0, 1, 1], [], []>} : vector<16x16xf32>, vector<16x32xf32>, vector<16x32xf32> -> vector<16x32xf32>
    %54 = vector.broadcast %33 : vector<1x32xf32> to vector<16x32xf32>
    %55 = arith.addf %53, %54 : vector<16x32xf32>
    %56 = arith.mulf %55, %55 : vector<16x32xf32>
    %57 = arith.mulf %55, %56 : vector<16x32xf32>
    %cst_63 = arith.constant 4.471500e-02 : f32
    %58 = vector.broadcast %cst_63 : f32 to vector<16x32xf32>
    %59 = arith.mulf %58, %57 : vector<16x32xf32>
    %60 = arith.addf %55, %59 : vector<16x32xf32>
    %cst_64 = arith.constant 0.797884583 : f32
    %61 = vector.broadcast %cst_64 : f32 to vector<16x32xf32>
    %62 = arith.mulf %61, %60 : vector<16x32xf32>
    %63 = math.tanh %62 : vector<16x32xf32>
    %cst_65 = arith.constant 1.000000e+00 : f32
    %64 = vector.broadcast %cst_65 : f32 to vector<16x32xf32>
    %65 = arith.addf %64, %63 : vector<16x32xf32>
    %cst_66 = arith.constant 5.000000e-01 : f32
    %66 = vector.broadcast %cst_66 : f32 to vector<16x32xf32>
    %67 = arith.mulf %66, %65 : vector<16x32xf32>
    %68 = arith.mulf %55, %67 : vector<16x32xf32>
    %c0_67 = arith.constant 0 : index
    %c32_68 = arith.constant 32 : index
    %69 = vector.load %arg4[%c0_67, %c32_68] : memref<16x128xf32, #tpu.memory_space<vmem>>, vector<16x32xf32>
    tpu.vector_store %arg4[%c0_67, %c32_68], %68 {strides = array<i32>} : memref<16x128xf32, #tpu.memory_space<vmem>>, vector<16x32xf32>,
    %c0_69 = arith.constant 0 : index
    %c32_70 = arith.constant 32 : index
    %70 = vector.load %arg5[%c0_69, %c32_70] : memref<16x64xf32, #tpu.memory_space<vmem>>, vector<16x16xf32>
    %cst_71 = arith.constant dense<0.000000e+00> : vector<16x32xf32>
    %71 = tpu.matmul %70, %32, %cst_71 {dimension_numbers = #tpu.dot_dimension_numbers<[1], [0], [0], [1], [0, 0, 1, 1], [], []>} : vector<16x16xf32>, vector<16x32xf32>, vector<16x32xf32> -> vector<16x32xf32>
    %72 = vector.broadcast %33 : vector<1x32xf32> to vector<16x32xf32>
    %73 = arith.addf %71, %72 : vector<16x32xf32>
    %74 = arith.mulf %73, %73 : vector<16x32xf32>
    %75 = arith.mulf %73, %74 : vector<16x32xf32>
    %cst_72 = arith.constant 4.471500e-02 : f32
    %76 = vector.broadcast %cst_72 : f32 to vector<16x32xf32>
    %77 = arith.mulf %76, %75 : vector<16x32xf32>
    %78 = arith.addf %73, %77 : vector<16x32xf32>
    %cst_73 = arith.constant 0.797884583 : f32
    %79 = vector.broadcast %cst_73 : f32 to vector<16x32xf32>
    %80 = arith.mulf %79, %78 : vector<16x32xf32>
    %81 = math.tanh %80 : vector<16x32xf32>
    %cst_74 = arith.constant 1.000000e+00 : f32
    %82 = vector.broadcast %cst_74 : f32 to vector<16x32xf32>
    %83 = arith.addf %82, %81 : vector<16x32xf32>
    %cst_75 = arith.constant 5.000000e-01 : f32
    %84 = vector.broadcast %cst_75 : f32 to vector<16x32xf32>
    %85 = arith.mulf %84, %83 : vector<16x32xf32>
    %86 = arith.mulf %73, %85 : vector<16x32xf32>
    %c0_76 = arith.constant 0 : index
    %c64 = arith.constant 64 : index
    %87 = vector.load %arg4[%c0_76, %c64] : memref<16x128xf32, #tpu.memory_space<vmem>>, vector<16x32xf32>
    tpu.vector_store %arg4[%c0_76, %c64], %86 {strides = array<i32>} : memref<16x128xf32, #tpu.memory_space<vmem>>, vector<16x32xf32>,
    %c0_77 = arith.constant 0 : index
    %c48_78 = arith.constant 48 : index
    %88 = vector.load %arg5[%c0_77, %c48_78] : memref<16x64xf32, #tpu.memory_space<vmem>>, vector<16x16xf32>
    %cst_79 = arith.constant dense<0.000000e+00> : vector<16x32xf32>
    %89 = tpu.matmul %88, %32, %cst_79 {dimension_numbers = #tpu.dot_dimension_numbers<[1], [0], [0], [1], [0, 0, 1, 1], [], []>} : vector<16x16xf32>, vector<16x32xf32>, vector<16x32xf32> -> vector<16x32xf32>
    %90 = vector.broadcast %33 : vector<1x32xf32> to vector<16x32xf32>
    %91 = arith.addf %89, %90 : vector<16x32xf32>
    %92 = arith.mulf %91, %91 : vector<16x32xf32>
    %93 = arith.mulf %91, %92 : vector<16x32xf32>
    %cst_80 = arith.constant 4.471500e-02 : f32
    %94 = vector.broadcast %cst_80 : f32 to vector<16x32xf32>
    %95 = arith.mulf %94, %93 : vector<16x32xf32>
    %96 = arith.addf %91, %95 : vector<16x32xf32>
    %cst_81 = arith.constant 0.797884583 : f32
    %97 = vector.broadcast %cst_81 : f32 to vector<16x32xf32>
    %98 = arith.mulf %97, %96 : vector<16x32xf32>
    %99 = math.tanh %98 : vector<16x32xf32>
    %cst_82 = arith.constant 1.000000e+00 : f32
    %100 = vector.broadcast %cst_82 : f32 to vector<16x32xf32>
    %101 = arith.addf %100, %99 : vector<16x32xf32>
    %cst_83 = arith.constant 5.000000e-01 : f32
    %102 = vector.broadcast %cst_83 : f32 to vector<16x32xf32>
    %103 = arith.mulf %102, %101 : vector<16x32xf32>
    %104 = arith.mulf %91, %103 : vector<16x32xf32>
    %c0_84 = arith.constant 0 : index
    %c96 = arith.constant 96 : index
    %105 = vector.load %arg4[%c0_84, %c96] : memref<16x128xf32, #tpu.memory_space<vmem>>, vector<16x32xf32>
    tpu.vector_store %arg4[%c0_84, %c96], %104 {strides = array<i32>} : memref<16x128xf32, #tpu.memory_space<vmem>>, vector<16x32xf32>,
    return
  }
  func.func @transform_0(%arg0: i32) -> (i32, i32) {
    %c0_i32 = arith.constant 0 : i32
    %c0_i32_0 = arith.constant 0 : i32
    return %arg0, %c0_i32 : i32, i32
  }
  func.func @transform_1(%arg0: i32) -> (i32, i32) {
    %c0_i32 = arith.constant 0 : i32
    %c0_i32_0 = arith.constant 0 : i32
    %c0_i32_1 = arith.constant 0 : i32
    return %c0_i32, %c0_i32_0 : i32, i32
  }
  func.func @transform_2(%arg0: i32) -> (i32, i32) {
    %c0_i32 = arith.constant 0 : i32
    %c0_i32_0 = arith.constant 0 : i32
    %c0_i32_1 = arith.constant 0 : i32
    return %c0_i32, %c0_i32_0 : i32, i32
  }
  func.func @transform_3(%arg0: i32) -> (i32, i32) {
    %c0_i32 = arith.constant 0 : i32
    %c0_i32_0 = arith.constant 0 : i32
    return %arg0, %c0_i32 : i32, i32
  }
}

</mosaic_0001>

<bundles_post_ra>
// kernel: mae_encoder_forward.1
= control target key start
LH: loop header
LB: loop body
LE: loop exit
PB: predicated region body
PF: predicated region fallthrough
CT: control target
= control target key end

     0   :  { %s1022_s12 = smov 0   ;;  %s1123_s0 = inlined_call_operand.vmem [shape: f32[64,64], index: 0, kind: input, shape index: {}]   ;;  %s1124_s1 = inlined_call_operand.vmem [shape: f32[16,32], index: 1, kind: input, shape index: {}]   ;;  %s1125_s2 = inlined_call_operand.vmem [shape: f32[1,32], index: 2, kind: input, shape index: {}]   ;;  %s1126_s3 = inlined_call_operand.vmem [shape: f32[64,128], index: 3, kind: output, shape index: {}]  }
   0x1 LB: > { %s868_s13 = sadd.s32 4294967295, %s989_s12   ;;  %p872_p0 = scmp.ge.s32.totalorder %s989_s12, 1  ;;  %s989_s12 = sphi %s1022_s12, %s13_s12  }
   0x2   : > { %p138_p1 = scmp.lt.s32.totalorder %s989_s12, 5 }
   0x4   : > { %p139_p2 = pnand %p872_p0, %p138_p1 }
   0x5   : > { %s873_s14 = sshll.u32 (!%p139_p2), %s868_s13, 1  ;;  %vm176_vm0 = vcmask (!%p139_p2), 31744   ;;  %s991_s19 = smov (!%p139_p2), 116   ;;  %v350_v2 = vld [vmem:[%s1124_s1] sm:$0xff] (!%p139_p2)  ;;  %v351_v3 = vld [vmem:[%s1124_s1 + $0x8] sm:$0xff] (!%p139_p2)  ;;  %vm189_vm1 = vcmask (!%p139_p2), 64544  }
   0x6   : > { %142 = sbr.rel (%p139_p2) target bundleno = 667 (0x29b), region = 32  ;;  %p163_p3 = scmp.lt.s32.totalorder (!%p139_p2), %s873_s14, 7  ;;  %v1074_v4 = vpack.c.bf16 (!%p139_p2), %v351_v3, %v350_v2  ;;  %vm202_vm2 = vcmask (!%p139_p2), 97344   ;;  %vm215_vm3 = vcmask (!%p139_p2), 130144   ;;  %vm228_vm4 = vcmask (!%p139_p2), 162944  }
   0x7   : > { %s992_s20 = smov (!%p139_p2), 104   ;;  %s993_s21 = smov (!%p139_p2), 92   ;;  %vm233_vm5 = vcmask (!%p139_p2), 195744   ;;  %vm246_vm6 = vcmask (!%p139_p2), 228544   ;;  %vm259_vm7 = vcmask (!%p139_p2), 261344   ;;  %vm272_vm8 = vcmask (!%p139_p2), 294144  }
   0x8   : > { %s994_s22 = smov (!%p139_p2), 12   ;;  %s995_s23 = smov (!%p139_p2), 24   ;;  %933 = vmatprep.subr.bf16.mxu0 (!%p139_p2), %v1074_v4  ;;  %937 = vmatprep.subr.bf16.mxu1 (!%p139_p2), %v1074_v4  ;;  %vm285_vm9 = vcmask (!%p139_p2), 326944   ;;  %vm290_vm10 = vcmask (!%p139_p2), 359744   ;;  %vm303_vm11 = vcmask (!%p139_p2), 392544   ;;  %vm316_vm12 = vcmask (!%p139_p2), 425344  }
   0x9   : > { %s996_s24 = smov (!%p139_p2), 36   ;;  %935 = vmatpush3.bf16.msra.mxu0 (!%p139_p2), %v1074_v4  ;;  %939 = vmatpush3.bf16.msra.mxu1 (!%p139_p2), %v1074_v4  ;;  %vm329_vm13 = vcmask (!%p139_p2), 458144   ;;  %vm342_vm14 = vcmask (!%p139_p2), 490944   ;;  %vm347_vm15 = vcmask (!%p139_p2), 523744   ;;  %s997_s29 = smov (!%p139_p2), 112  }
   0xa   : > { %941 = vmatprep.subr.bf16.mxu0 (!%p139_p2), %v1074_v4  ;;  %945 = vmatprep.subr.bf16.mxu1 (!%p139_p2), %v1074_v4  ;;  %s998_s30 = smov (!%p139_p2), 96   ;;  %s999_s4 = smov (!%p139_p2), 80   ;;  %v877_v37 = vld [vmem:[%s1125_s2] ss:$0 sm:$0xff] (!%p139_p2) }
   0xb   : > { %s1000_s10 = smov (!%p139_p2), 32   ;;  %s1001_s11 = smov (!%p139_p2), 64  }
   0xd   : > { %s1128_s14 = smov (!%p163_p3, %s873_s14), 7 }
   0xe   : > { %s874_s15 = sshll.u32 %s1128_s14, 3 }
   0xf   : > { %s166_s18 = scalar_lea.vmem %s1123_s0, %s874_s15  ;;  %s1108_s9 = scalar_lea.vmem %s1126_s3, %s874_s15 }
  0x10   : > { %v1038_v0 = vld [vmem:[%s166_s18] sm:$0xff]  ;;  %v1040_v1 = vld [vmem:[%s166_s18 + $0x8] sm:$0xff] }
  0x11   : > { %183 = vrot.lane.b32.xlu0 %v1038_v0, %s991_s19  ;;  %196 = vrot.lane.b32.xlu1 %v1038_v0, %s992_s20  ;;  %177 = vst.msk [vmem:[#allocation2] sm:$0xff] %vm176_vm0, %v1038_v0  ;;  %178 = vst.msk [vmem:[#allocation2 + $0x8] sm:$0xff] %vm176_vm0, %v1040_v1  ;;  %vm361_vm0 = vcmask 130048  }
  0x15   : > { %185 = vrot.lane.b32.xlu0 %v1040_v1, %s991_s19  ;;  %198 = vrot.lane.b32.xlu1 %v1040_v1, %s992_s20 }
  0x19   : > { %209 = vrot.lane.b32.xlu0 %v1038_v0, %s993_s21  ;;  %211 = vrot.lane.b32.xlu1 %v1040_v1, %s993_s21 }
  0x1d   : > { %222 = vrot.lane.b32.xlu0 %v1038_v0, %s994_s22  ;;  %224 = vrot.lane.b32.xlu1 %v1040_v1, %s994_s22 }
  0x21   : > { %240 = vrot.lane.b32.xlu0 %v1038_v0, %s991_s19  ;;  %242 = vrot.lane.b32.xlu1 %v1040_v1, %s991_s19 }
  0x25   : > { %253 = vrot.lane.b32.xlu0 %v1038_v0, %s992_s20  ;;  %255 = vrot.lane.b32.xlu1 %v1040_v1, %s992_s20 }
  0x29   : > { %266 = vrot.lane.b32.xlu0 %v1038_v0, %s995_s23  ;;  %268 = vrot.lane.b32.xlu1 %v1040_v1, %s995_s23 }
  0x2d   : > { %279 = vrot.lane.b32.xlu0 %v1038_v0, %s994_s22  ;;  %281 = vrot.lane.b32.xlu1 %v1040_v1, %s994_s22 }
  0x31   : > { %297 = vrot.lane.b32.xlu0 %v1038_v0, %s991_s19  ;;  %299 = vrot.lane.b32.xlu1 %v1040_v1, %s991_s19 }
  0x35   : > { %310 = vrot.lane.b32.xlu0 %v1038_v0, %s996_s24  ;;  %312 = vrot.lane.b32.xlu1 %v1040_v1, %s996_s24 }
  0x39   : > { %323 = vrot.lane.b32.xlu0 %v1038_v0, %s995_s23  ;;  %325 = vrot.lane.b32.xlu1 %v1040_v1, %s995_s23 }
  0x3d   : > { %336 = vrot.lane.b32.xlu0 %v1038_v0, %s994_s22  ;;  %338 = vrot.lane.b32.xlu1 %v1040_v1, %s994_s22 }
  0x83   : > { %v184_v5 = vpop.permute.xlu0 %183  ;;  %v197_v6 = vpop.permute.xlu1 %196 }
  0x84   : > { %190 = vst.msk [vmem:[#allocation2] sm:$0xff] %vm189_vm1, %v184_v5 }
  0x85   : > { %203 = vst.msk [vmem:[#allocation2] sm:$0xff] %vm202_vm2, %v197_v6 }
  0x87   : > { %v186_v7 = vpop.permute.xlu0 %185  ;;  %v199_v8 = vpop.permute.xlu1 %198 }
  0x88   : > { %191 = vst.msk [vmem:[#allocation2 + $0x8] sm:$0xff] %vm189_vm1, %v186_v7  ;;  %vm461_vm1 = vcmask 261120  }
  0x89   : > { %204 = vst.msk [vmem:[#allocation2 + $0x8] sm:$0xff] %vm202_vm2, %v199_v8  ;;  %vm577_vm2 = vcmask 523520  }
  0x8b   : > { %v210_v9 = vpop.permute.xlu0 %209  ;;  %v212_v10 = vpop.permute.xlu1 %211 }
  0x8c   : > { %216 = vst.msk [vmem:[#allocation2] sm:$0xff] %vm215_vm3, %v210_v9  ;;  %217 = vst.msk [vmem:[#allocation2 + $0x8] sm:$0xff] %vm215_vm3, %v212_v10  ;;  %vm693_vm3 = vcmask 785920  }
  0x8f   : > { %v223_v11 = vpop.permute.xlu0 %222  ;;  %v225_v12 = vpop.permute.xlu1 %224 }
  0x90   : > { %229 = vst.msk [vmem:[#allocation2] sm:$0xff] %vm228_vm4, %v223_v11  ;;  %230 = vst.msk [vmem:[#allocation2 + $0x8] sm:$0xff] %vm228_vm4, %v225_v12  ;;  %vm809_vm4 = vcmask 1048320  }
  0x91   : > { %234 = vst.msk [vmem:[#allocation2] sm:$0xff] %vm233_vm5, %v1038_v0  ;;  %235 = vst.msk [vmem:[#allocation2 + $0x8] sm:$0xff] %vm233_vm5, %v1040_v1 }
  0x93   : > { %v241_v13 = vpop.permute.xlu0 %240  ;;  %v243_v14 = vpop.permute.xlu1 %242 }
  0x94   : > { %247 = vst.msk [vmem:[#allocation2] sm:$0xff] %vm246_vm6, %v241_v13  ;;  %248 = vst.msk [vmem:[#allocation2 + $0x8] sm:$0xff] %vm246_vm6, %v243_v14 }
  0x97   : > { %v254_v15 = vpop.permute.xlu0 %253  ;;  %v256_v16 = vpop.permute.xlu1 %255 }
  0x98   : > { %260 = vst.msk [vmem:[#allocation2] sm:$0xff] %vm259_vm7, %v254_v15  ;;  %261 = vst.msk [vmem:[#allocation2 + $0x8] sm:$0xff] %vm259_vm7, %v256_v16 }
  0x9b   : > { %v267_v17 = vpop.permute.xlu0 %266  ;;  %v269_v18 = vpop.permute.xlu1 %268 }
  0x9c   : > { %273 = vst.msk [vmem:[#allocation2] sm:$0xff] %vm272_vm8, %v267_v17  ;;  %274 = vst.msk [vmem:[#allocation2 + $0x8] sm:$0xff] %vm272_vm8, %v269_v18 }
  0x9f   : > { %v280_v19 = vpop.permute.xlu0 %279  ;;  %v282_v20 = vpop.permute.xlu1 %281 }
  0xa0   : > { %286 = vst.msk [vmem:[#allocation2] sm:$0xff] %vm285_vm9, %v280_v19  ;;  %287 = vst.msk [vmem:[#allocation2 + $0x8] sm:$0xff] %vm285_vm9, %v282_v20 }
  0xa1   : > { %291 = vst.msk [vmem:[#allocation2] sm:$0xff] %vm290_vm10, %v1038_v0  ;;  %292 = vst.msk [vmem:[#allocation2 + $0x8] sm:$0xff] %vm290_vm10, %v1040_v1 }
  0xa3   : > { %v298_v21 = vpop.permute.xlu0 %297  ;;  %v300_v22 = vpop.permute.xlu1 %299 }
  0xa4   : > { %304 = vst.msk [vmem:[#allocation2] sm:$0xff] %vm303_vm11, %v298_v21  ;;  %305 = vst.msk [vmem:[#allocation2 + $0x8] sm:$0xff] %vm303_vm11, %v300_v22 }
  0xa7   : > { %v311_v23 = vpop.permute.xlu0 %310  ;;  %v313_v24 = vpop.permute.xlu1 %312 }
  0xa8   : > { %317 = vst.msk [vmem:[#allocation2] sm:$0xff] %vm316_vm12, %v311_v23  ;;  %318 = vst.msk [vmem:[#allocation2 + $0x8] sm:$0xff] %vm316_vm12, %v313_v24 }
  0xab   : > { %v324_v25 = vpop.permute.xlu0 %323  ;;  %v326_v26 = vpop.permute.xlu1 %325 }
  0xac   : > { %330 = vst.msk [vmem:[#allocation2] sm:$0xff] %vm329_vm13, %v324_v25  ;;  %331 = vst.msk [vmem:[#allocation2 + $0x8] sm:$0xff] %vm329_vm13, %v326_v26 }
  0xaf   : > { %v337_v27 = vpop.permute.xlu0 %336  ;;  %v339_v28 = vpop.permute.xlu1 %338 }
  0xb0   : > { %343 = vst.msk [vmem:[#allocation2] sm:$0xff] %vm342_vm14, %v337_v27  ;;  %344 = vst.msk [vmem:[#allocation2 + $0x8] sm:$0xff] %vm342_vm14, %v339_v28 }
  0xb1   : > { %348 = vst.msk [vmem:[#allocation2] sm:$0xff] %vm347_vm15, %v1038_v0  ;;  %349 = vst.msk [vmem:[#allocation2 + $0x8] sm:$0xff] %vm347_vm15, %v1040_v1 }
  0xb8   : > { %v464_v29 = vld [vmem:[#allocation2] sm:$0xff]  ;;  %v465_v30 = vld [vmem:[#allocation2 + $0x8] sm:$0xff] }
  0xb9   : > { %468 = vrot.lane.b32.xlu0 %v464_v29, %s997_s29  ;;  %470 = vrot.lane.b32.xlu1 %v465_v30, %s997_s29 }
  0xba   : > { %908 = vmatprep.mubr.msk.f32.mxu0 %vm361_vm0, %v464_v29 }
  0xbb   : > { %909 = vmatmul.mubr.msk.f32.vlgmr.msra.gmra.mrb[0].mxu0 %vm361_vm0, %v465_v30 }
  0xbc   : > { %943 = vmatpush3.bf16.msra.mxu0 %v1074_v4 }
  0xbd   : > { %584 = vrot.lane.b32.xlu0 %v464_v29, %s998_s30  ;;  %586 = vrot.lane.b32.xlu1 %v465_v30, %s998_s30 }
  0xc1   : > { %700 = vrot.lane.b32.xlu0 %v464_v29, %s999_s4  ;;  %702 = vrot.lane.b32.xlu1 %v465_v30, %s999_s4 }
 0x12b   : > { %v469_v31 = vpop.permute.xlu0 %468  ;;  %v471_v32 = vpop.permute.xlu1 %470 }
 0x12c   : > { %915 = vmatprep.mubr.msk.f32.mxu1 %vm361_vm0, %v469_v31 }
 0x12d   : > { %916 = vmatmul.mubr.msk.f32.vlgmr.msra.gmra.mrb[0].mxu1 %vm361_vm0, %v471_v32 }
 0x12e   : > { %947 = vmatpush3.bf16.msra.mxu1 %v1074_v4 }
 0x12f   : > { %v585_v33 = vpop.permute.xlu0 %584  ;;  %v587_v34 = vpop.permute.xlu1 %586 }
 0x130   : > { %922 = vmatprep.mubr.msk.f32.mxu0 %vm361_vm0, %v585_v33 }
 0x131   : > { %923 = vmatmul.mubr.msk.f32.vlgmr.msra.gmra.mrb[2].mxu0 %vm361_vm0, %v587_v34 }
 0x133   : > { %v701_v35 = vpop.permute.xlu0 %700  ;;  %v703_v36 = vpop.permute.xlu1 %702 }
 0x134   : > { %929 = vmatprep.mubr.msk.f32.mxu1 %vm361_vm0, %v701_v35 }
 0x135   : > { %930 = vmatmul.mubr.msk.f32.vlgmr.msra.gmra.mrb[2].mxu1 %vm361_vm0, %v703_v36 }
 0x18e   : > { %v910_v38 = vpop.f32.mrb[0].mxu0 }
 0x18f   : > { %v440_v39 = vadd.f32 %v910_v38, %v877_v37  ;;  %v434_v40 = vpop.f32.mrb[1].mxu0 }
 0x190   : > { %v435_v41 = vadd.f32 %v877_v37, %v434_v40 }
 0x191   : > { %v444_v42 = vmul.f32 %v440_v39, %v440_v39 }
 0x192   : > { %v443_v43 = vmul.f32 %v435_v41, %v435_v41 }
 0x193   : > { %v446_v44 = vmul.f32 %v444_v42, %v440_v39 }
 0x194   : > { %v445_v45 = vmul.f32 %v443_v43, %v435_v41 }
 0x195   : > { %v448_v46 = vmul.f32 0.044715, %v446_v44 }
 0x196   : > { %v447_v47 = vmul.f32 0.044715, %v445_v45 }
 0x197   : > { %v450_v48 = vadd.f32 %v448_v46, %v440_v39 }
 0x198   : > { %v449_v49 = vadd.f32 %v447_v47, %v435_v41 }
 0x199   : > { %v452_v50 = vmul.f32 0.7978846, %v450_v48 }
 0x19a   : > { %v451_v51 = vmul.f32 0.7978846, %v449_v49 }
 0x19b   : > { %967 = vtanh.f32 %v452_v50 }
 0x19c   : > { %969 = vtanh.f32 %v451_v51 }
 0x1a5   : > { %v968_v52 = vpop.eup %967 }
 0x1a6   : > { %v970_v53 = vpop.eup %969  ;;  %v456_v54 = vadd.f32 1.0, %v968_v52 }
 0x1a7   : > { %v455_v55 = vadd.f32 1.0, %v970_v53 }
 0x1a8   : > { %v458_v56 = vmul.f32 0.5, %v456_v54 }
 0x1a9   : > { %v457_v57 = vmul.f32 0.5, %v455_v55 }
 0x1aa   : > { %v460_v58 = vmul.f32 %v458_v56, %v440_v39 }
 0x1ab   : > { %v459_v59 = vmul.f32 %v457_v57, %v435_v41 }
 0x1ac   : > { %463 = vst.msk [vmem:[%s1108_s9 + $0x8] sm:$0xff] %vm461_vm1, %v460_v58 }
 0x1ad   : > { %462 = vst.msk [vmem:[%s1108_s9] sm:$0xff] %vm461_vm1, %v459_v59 }
 0x200   : > { %v917_v60 = vpop.f32.mrb[0].mxu1 }
 0x201   : > { %v548_v61 = vadd.f32 %v917_v60, %v877_v37  ;;  %v542_v62 = vpop.f32.mrb[1].mxu1 }
 0x202   : > { %v543_v63 = vadd.f32 %v877_v37, %v542_v62 }
 0x203   : > { %v552_v0 = vmul.f32 %v548_v61, %v548_v61 }
 0x204   : > { %v551_v1 = vmul.f32 %v543_v63, %v543_v63  ;;  %v924_v2 = vpop.f32.mrb[2].mxu0 }
 0x205   : > { %v554_v3 = vmul.f32 %v552_v0, %v548_v61  ;;  %v664_v4 = vadd.f32 %v924_v2, %v877_v37  ;;  %v658_v5 = vpop.f32.mrb[3].mxu0 }
 0x206   : > { %v553_v6 = vmul.f32 %v551_v1, %v543_v63  ;;  %v659_v7 = vadd.f32 %v877_v37, %v658_v5 }
 0x207   : > { %v556_v8 = vmul.f32 0.044715, %v554_v3  ;;  %v668_v9 = vmul.f32 %v664_v4, %v664_v4 }
 0x208   : > { %v555_v10 = vmul.f32 0.044715, %v553_v6  ;;  %v667_v11 = vmul.f32 %v659_v7, %v659_v7  ;;  %v931_v12 = vpop.f32.mrb[2].mxu1 }
 0x209   : > { %v558_v13 = vadd.f32 %v556_v8, %v548_v61  ;;  %v670_v14 = vmul.f32 %v668_v9, %v664_v4  ;;  %v780_v15 = vadd.f32 %v931_v12, %v877_v37  ;;  %v774_v16 = vpop.f32.mrb[3].mxu1 }
 0x20a   : > { %v557_v17 = vadd.f32 %v555_v10, %v543_v63  ;;  %v669_v18 = vmul.f32 %v667_v11, %v659_v7  ;;  %v775_v19 = vadd.f32 %v877_v37, %v774_v16 }
 0x20b   : > { %v560_v20 = vmul.f32 0.7978846, %v558_v13  ;;  %v672_v21 = vmul.f32 0.044715, %v670_v14  ;;  %v784_v22 = vmul.f32 %v780_v15, %v780_v15 }
 0x20c   : > { %v559_v23 = vmul.f32 0.7978846, %v557_v17  ;;  %v671_v24 = vmul.f32 0.044715, %v669_v18  ;;  %v783_v25 = vmul.f32 %v775_v19, %v775_v19 }
 0x20d   : > { %v674_v26 = vadd.f32 %v672_v21, %v664_v4  ;;  %v786_v27 = vmul.f32 %v784_v22, %v780_v15  ;;  %971 = vtanh.f32 %v560_v20 }
 0x20e   : > { %v673_v28 = vadd.f32 %v671_v24, %v659_v7  ;;  %v785_v29 = vmul.f32 %v783_v25, %v775_v19  ;;  %973 = vtanh.f32 %v559_v23 }
 0x20f   : > { %v676_v30 = vmul.f32 0.7978846, %v674_v26  ;;  %v788_v31 = vmul.f32 0.044715, %v786_v27 }
 0x210   : > { %v675_v32 = vmul.f32 0.7978846, %v673_v28  ;;  %v787_v33 = vmul.f32 0.044715, %v785_v29 }
 0x211   : > { %v790_v34 = vadd.f32 %v788_v31, %v780_v15  ;;  %975 = vtanh.f32 %v676_v30 }
 0x212   : > { %v789_v35 = vadd.f32 %v787_v33, %v775_v19  ;;  %977 = vtanh.f32 %v675_v32 }
 0x213   : > { %v792_v36 = vmul.f32 0.7978846, %v790_v34 }
 0x214   : > { %v791_v37 = vmul.f32 0.7978846, %v789_v35 }
 0x215   : > { %979 = vtanh.f32 %v792_v36 }
 0x216   : > { %981 = vtanh.f32 %v791_v37 }
 0x217   : > { %v972_v38 = vpop.eup %971 }
 0x218   : > { %v974_v39 = vpop.eup %973  ;;  %v564_v40 = vadd.f32 1.0, %v972_v38 }
 0x219   : > { %v563_v41 = vadd.f32 1.0, %v974_v39 }
 0x21a   : > { %v566_v42 = vmul.f32 0.5, %v564_v40 }
 0x21b   : > { %v976_v43 = vpop.eup %975  ;;  %v565_v44 = vmul.f32 0.5, %v563_v41 }
 0x21c   : > { %v978_v45 = vpop.eup %977  ;;  %v568_v46 = vmul.f32 %v566_v42, %v548_v61  ;;  %v680_v47 = vadd.f32 1.0, %v976_v43 }
 0x21d   : > { %v567_v48 = vmul.f32 %v565_v44, %v543_v63  ;;  %v679_v49 = vadd.f32 1.0, %v978_v45 }
 0x21e   : > { %573 = vrot.lane.b32.xlu1 %v568_v46, %s1000_s10  ;;  %v682_v50 = vmul.f32 0.5, %v680_v47 }
 0x21f   : > { %v980_v51 = vpop.eup %979  ;;  %571 = vrot.lane.b32.xlu0 %v567_v48, %s1000_s10  ;;  %v681_v52 = vmul.f32 0.5, %v679_v49 }
 0x220   : > { %v982_v53 = vpop.eup %981  ;;  %v684_v54 = vmul.f32 %v682_v50, %v664_v4  ;;  %v796_v55 = vadd.f32 1.0, %v980_v51 }
 0x221   : > { %v683_v56 = vmul.f32 %v681_v52, %v659_v7  ;;  %v795_v57 = vadd.f32 1.0, %v982_v53 }
 0x222   : > { %689 = vrot.lane.b32.xlu1 %v684_v54, %s1001_s11  ;;  %v798_v58 = vmul.f32 0.5, %v796_v55 }
 0x223   : > { %687 = vrot.lane.b32.xlu0 %v683_v56, %s1001_s11  ;;  %v797_v59 = vmul.f32 0.5, %v795_v57 }
 0x224   : > { %v800_v60 = vmul.f32 %v798_v58, %v780_v15 }
 0x225   : > { %v799_v61 = vmul.f32 %v797_v59, %v775_v19 }
 0x226   : > { %805 = vrot.lane.b32.xlu1 %v800_v60, %s998_s30 }
 0x227   : > { %803 = vrot.lane.b32.xlu0 %v799_v61, %s998_s30 }
 0x290   : > { %v574_v62 = vpop.permute.xlu1 %573 }
 0x291   : > { %v572_v63 = vpop.permute.xlu0 %571  ;;  %579 = vst.msk [vmem:[%s1108_s9 + $0x8] sm:$0xff] %vm577_vm2, %v574_v62 }
 0x292   : > { %578 = vst.msk [vmem:[%s1108_s9] sm:$0xff] %vm577_vm2, %v572_v63 }
 0x294   : > { %v690_v0 = vpop.permute.xlu1 %689 }
 0x295   : > { %v688_v1 = vpop.permute.xlu0 %687  ;;  %695 = vst.msk [vmem:[%s1108_s9 + $0x8] sm:$0xff] %vm693_vm3, %v690_v0 }
 0x296   : > { %694 = vst.msk [vmem:[%s1108_s9] sm:$0xff] %vm693_vm3, %v688_v1 }
 0x298   : > { %v806_v3 = vpop.permute.xlu1 %805 }
 0x299   : > { %v804_v2 = vpop.permute.xlu0 %803  ;;  %811 = vst.msk [vmem:[%s1108_s9 + $0x8] sm:$0xff] %vm809_vm4, %v806_v3 }
 0x29a   : > { %810 = vst.msk [vmem:[%s1108_s9] sm:$0xff] %vm809_vm4, %v804_v2 }
 0x29b PF: > { %s13_s12 = sadd.s32 1, %s989_s12  }
 0x29c   : > { %p10_p4 = scmp.ge.s32.totalorder %s13_s12, 6  }
 0x29e   :  { %12 = sbr.rel (!%p10_p4) target bundleno = 1 (0x1), region = 62 }

</bundles_post_ra>
